<compile_context>
chip_gen: v7x
topology: tpu7x:2x2x1
jax: 0.10.0
libtpu: 0.0.40
codegen_flags: <defaults>
</compile_context>

<pallas_src>
import jax
import jax.numpy as jnp
from jax.experimental import pallas as pl
from jax.experimental.pallas import tpu as pltpu

_CPAD = 128  # lane-dense output width for the final projection


# ----------------------------------------------------------------------------- kernel

def _fused_kernel(x_ref, wr, br, wm, bm, w1, b1, w2, b2, w3, b3, w4, b4, w5, b5, o_ref):
    """refine stand-in + mapping + self.mlp + tanh on one (tm, 256) row tile."""
    # refine stand-in: 8x8/stride-8 patchify conv + ReLU   (tm,256)@(256,512)
    h = jnp.maximum(
        jnp.dot(x_ref[...], wr[...], preferred_element_type=jnp.float32) + br[...], 0.0)
    # self.mapping = nn.Conv2d(512, 64, 1)
    h = jnp.dot(h, wm[...], preferred_element_type=jnp.float32) + bm[...]
    # self.mlp: 4x (Conv2d(64,64,1) + ReLU)
    for wgt, bias in ((w1, b1), (w2, b2), (w3, b3), (w4, b4)):
        h = jnp.maximum(
            jnp.dot(h, wgt[...], preferred_element_type=jnp.float32) + bias[...], 0.0)
    # final Conv2d(64,3,1) (zero-padded to 128 lanes) + torch.tanh
    y = jnp.dot(h, w5[...], preferred_element_type=jnp.float32) + b5[...]
    o_ref[...] = jnp.tanh(y).astype(o_ref.dtype)


def fused_pointwise_chain(rows, params, *, tm):
    """rows: (M, 256) with M a multiple of tm -> (M, 3)."""
    M, Cin = rows.shape
    (wr, br) = params["refine"]
    (wm, bm) = params["mapping"]
    (w1, b1), (w2, b2), (w3, b3), (w4, b4), (w5, b5) = params["mlp"]
    cout = w5.shape[1]

    # Pad final projection to a full 128-lane output: unmasked lane-dense stores and
    # dense writeback DMA. Padded lanes carry tanh(0)=0 and are sliced off below.
    w5p = jnp.pad(w5, ((0, 0), (0, _CPAD - cout)))
    b5p = jnp.pad(b5, ((0, 0), (0, _CPAD - cout)))

    weights = (wr, br, wm, bm, w1, b1, w2, b2, w3, b3, w4, b4, w5p, b5p)
    full = lambda i: (0, 0)  # constant block index -> weights stay VMEM-resident
    in_specs = [pl.BlockSpec((tm, Cin), lambda i: (i, 0))]
    in_specs += [pl.BlockSpec(p.shape, full) for p in weights]

    flops = 2 * M * (256 * 512 + 512 * 64 + 4 * 64 * 64 + 64 * _CPAD)
    bytes_accessed = 4 * (M * (Cin + _CPAD) + sum(int(p.size) for p in weights))

    out = pl.pallas_call(
        _fused_kernel,
        out_shape=jax.ShapeDtypeStruct((M, _CPAD), rows.dtype),
        grid=(M // tm,),
        in_specs=in_specs,
        out_specs=pl.BlockSpec((tm, _CPAD), lambda i: (i, 0)),
        compiler_params=pltpu.CompilerParams(dimension_semantics=("parallel",)),
        cost_estimate=pl.CostEstimate(flops=flops, transcendentals=M * _CPAD,
                                      bytes_accessed=bytes_accessed),
    )(rows, *weights)
    return out[:, :cout]


# ----------------------------------------------------------------------------- glue

def _round_up(x, m):
    return ((x + m - 1) // m) * m


def _space_to_depth(x, p):
    # NCHW -> rows of pxp patches: (N*(H/p)*(W/p), C*p*p)
    n, c, h, w = x.shape
    x = x.reshape(n, c, h // p, p, w // p, p)
    x = jnp.transpose(x, (0, 2, 4, 1, 3, 5))
    return x.reshape(n * (h // p) * (w // p), c * p * p)


def mlp_model_forward(x, params, *, tm=1024):
    """Forward pass of MLPModel. x: (N, 4, H, W) float32 NCHW -> (N, 3, H, W)."""
    n, _, h, w = x.shape
    hl, wl = h // 8, w // 8  # FFCResNetGenerator with n_downsampling=3 -> /8 spatial

    # TODO(synk): self.refine = FFCResNetGenerator(4,3,ngf=64,n_downsampling=3,n_blocks=6,
    # decode=False) uses FFT-based Fast Fourier Convolution residual blocks whose source is
    # not part of this module and has no clean Pallas TPU equivalent; it is replaced by a
    # deterministic stand-in that reproduces only its output contract (N, 64*8, H/8, W/8):
    # an 8x8/stride-8 patchify conv (fused into the Pallas matmul chain) + ReLU.
    patches = _space_to_depth(x, 8)                       # (M, 256), M = N*hl*wl
    M = patches.shape[0]

    # Row tile: up to tm, always a multiple of 8; pad M so every grid tile is full.
    tile = min(tm, _round_up(M, 8))
    m_pad = _round_up(M, tile)
    if m_pad != M:
        patches = jnp.pad(patches, ((0, m_pad - M), (0, 0)))

    # Entire per-pixel chain (refine stand-in -> mapping -> mlp -> tanh) at LOW resolution.
    out_rows = fused_pointwise_chain(patches, params, tm=tile)[:M]     # (M, 3)

    # F.interpolate(mode='nearest', size=(h, w)) with an exact x8 factor is index
    # repetition; every op after it in the PyTorch model is per-pixel, so applying
    # the upsample AFTER the mlp/tanh is exact — and only 3 channels are replicated.
    feat = out_rows.reshape(n, hl, wl, 3)
    feat = jnp.repeat(jnp.repeat(feat, h // hl, axis=1), w // wl, axis=2)
    return jnp.transpose(feat, (0, 3, 1, 2))              # NHWC -> NCHW


# ----------------------------------------------------------------------------- params

def _conv1x1_init(key, cin, cout):
    # Mirrors PyTorch Conv2d default: U(-1/sqrt(fan_in), 1/sqrt(fan_in))
    kw, kb = jax.random.split(key)
    bound = 1.0 / jnp.sqrt(jnp.asarray(cin, jnp.float32))
    wgt = jax.random.uniform(kw, (cin, cout), jnp.float32, -bound, bound)
    bias = jax.random.uniform(kb, (1, cout), jnp.float32, -bound, bound)
    return wgt, bias


def init_params(key):
    keys = jax.random.split(key, 7)
    refine = _conv1x1_init(keys[0], 4 * 8 * 8, 64 * 8)     # refine stand-in: 256 -> 512
    mapping = _conv1x1_init(keys[1], 64 * 8, 64)           # mapping: Conv2d(512, 64, 1)
    mlp = [_conv1x1_init(keys[2 + i], 64, 64) for i in range(4)]   # Conv2d(64,64,1) x4
    mlp.append(_conv1x1_init(keys[6], 64, 3))              # Conv2d(64, 3, 1)
    return {"refine": refine, "mapping": mapping, "mlp": tuple(mlp)}


# ----------------------------------------------------------------------------- main

if __name__ == "__main__":
    key = jax.random.PRNGKey(0)
    k_x, k_p = jax.random.split(key)

    x = jax.random.normal(k_x, (2, 4, 16, 16), dtype=jnp.float32)   # NCHW, 4 input channels
    params = init_params(k_p)

    out = jax.block_until_ready(jax.jit(mlp_model_forward)(x, params))

    assert out.shape == (2, 3, 16, 16), out.shape
    assert bool(jnp.all(jnp.isfinite(out)))
    assert bool(jnp.all(jnp.abs(out) <= 1.0))  # tanh-bounded
    # nearest-neighbor upsample sanity: each 8x8 output block is constant per channel
    blk = out[:, :, 0:8, 0:8]
    assert bool(jnp.all(blk == blk[:, :, :1, :1]))
    print("KERNEL_OK")
</pallas_src>

<mosaic_0001>
module attributes {stable_mosaic.version = 11 : i64} {
  func.func @_fused_kernel(%arg0: i32, %arg1: memref<8x256xf32, #tpu.memory_space<vmem>>, %arg2: memref<256x512xf32, #tpu.memory_space<vmem>>, %arg3: memref<1x512xf32, #tpu.memory_space<vmem>>, %arg4: memref<512x64xf32, #tpu.memory_space<vmem>>, %arg5: memref<1x64xf32, #tpu.memory_space<vmem>>, %arg6: memref<64x64xf32, #tpu.memory_space<vmem>>, %arg7: memref<1x64xf32, #tpu.memory_space<vmem>>, %arg8: memref<64x64xf32, #tpu.memory_space<vmem>>, %arg9: memref<1x64xf32, #tpu.memory_space<vmem>>, %arg10: memref<64x64xf32, #tpu.memory_space<vmem>>, %arg11: memref<1x64xf32, #tpu.memory_space<vmem>>, %arg12: memref<64x64xf32, #tpu.memory_space<vmem>>, %arg13: memref<1x64xf32, #tpu.memory_space<vmem>>, %arg14: memref<64x128xf32, #tpu.memory_space<vmem>>, %arg15: memref<1x128xf32, #tpu.memory_space<vmem>>, %arg16: memref<8x128xf32, #tpu.memory_space<vmem>>) attributes {dimension_semantics = [#tpu.dimension_semantics<parallel>], iteration_bounds = array<i64: 1>, scalar_prefetch = 0 : i64, scratch_operands = 0 : i64, tpu.core_type = #tpu.core_type<tc>, window_params = [{transform_indices = @transform_0, window_bounds = array<i64: 8, 256>}, {pipeline_mode = #tpu.pipeline_mode<synchronous>, transform_indices = @transform_1, window_bounds = array<i64: 256, 512>}, {pipeline_mode = #tpu.pipeline_mode<synchronous>, transform_indices = @transform_2, window_bounds = array<i64: 1, 512>}, {pipeline_mode = #tpu.pipeline_mode<synchronous>, transform_indices = @transform_3, window_bounds = array<i64: 512, 64>}, {pipeline_mode = #tpu.pipeline_mode<synchronous>, transform_indices = @transform_4, window_bounds = array<i64: 1, 64>}, {pipeline_mode = #tpu.pipeline_mode<synchronous>, transform_indices = @transform_5, window_bounds = array<i64: 64, 64>}, {pipeline_mode = #tpu.pipeline_mode<synchronous>, transform_indices = @transform_6, window_bounds = array<i64: 1, 64>}, {pipeline_mode = #tpu.pipeline_mode<synchronous>, transform_indices = @transform_7, window_bounds = array<i64: 64, 64>}, {pipeline_mode = #tpu.pipeline_mode<synchronous>, transform_indices = @transform_8, window_bounds = array<i64: 1, 64>}, {pipeline_mode = #tpu.pipeline_mode<synchronous>, transform_indices = @transform_9, window_bounds = array<i64: 64, 64>}, {pipeline_mode = #tpu.pipeline_mode<synchronous>, transform_indices = @transform_10, window_bounds = array<i64: 1, 64>}, {pipeline_mode = #tpu.pipeline_mode<synchronous>, transform_indices = @transform_11, window_bounds = array<i64: 64, 64>}, {pipeline_mode = #tpu.pipeline_mode<synchronous>, transform_indices = @transform_12, window_bounds = array<i64: 1, 64>}, {pipeline_mode = #tpu.pipeline_mode<synchronous>, transform_indices = @transform_13, window_bounds = array<i64: 64, 128>}, {pipeline_mode = #tpu.pipeline_mode<synchronous>, transform_indices = @transform_14, window_bounds = array<i64: 1, 128>}, {transform_indices = @transform_15, window_bounds = array<i64: 8, 128>}]} {
    %c0 = arith.constant 0 : index
    %c0_0 = arith.constant 0 : index
    %0 = vector.load %arg1[%c0, %c0_0] : memref<8x256xf32, #tpu.memory_space<vmem>>, vector<8x256xf32>
    %c0_1 = arith.constant 0 : index
    %c0_2 = arith.constant 0 : index
    %1 = vector.load %arg2[%c0_1, %c0_2] : memref<256x512xf32, #tpu.memory_space<vmem>>, vector<256x512xf32>
    %cst = arith.constant dense<0.000000e+00> : vector<8x512xf32>
    %2 = tpu.matmul %0, %1, %cst {dimension_numbers = #tpu.dot_dimension_numbers<[1], [0], [0], [1], [0, 0, 1, 1], [], []>} : vector<8x256xf32>, vector<256x512xf32>, vector<8x512xf32> -> vector<8x512xf32>
    %c0_3 = arith.constant 0 : index
    %c0_4 = arith.constant 0 : index
    %3 = vector.load %arg3[%c0_3, %c0_4] : memref<1x512xf32, #tpu.memory_space<vmem>>, vector<1x512xf32>
    %4 = vector.broadcast %3 : vector<1x512xf32> to vector<8x512xf32>
    %5 = arith.addf %2, %4 : vector<8x512xf32>
    %cst_5 = arith.constant 0.000000e+00 : f32
    %6 = vector.broadcast %cst_5 : f32 to vector<8x512xf32>
    %7 = arith.maximumf %5, %6 : vector<8x512xf32>
    %c0_6 = arith.constant 0 : index
    %c0_7 = arith.constant 0 : index
    %8 = vector.load %arg4[%c0_6, %c0_7] : memref<512x64xf32, #tpu.memory_space<vmem>>, vector<512x64xf32>
    %cst_8 = arith.constant dense<0.000000e+00> : vector<8x64xf32>
    %9 = tpu.matmul %7, %8, %cst_8 {dimension_numbers = #tpu.dot_dimension_numbers<[1], [0], [0], [1], [0, 0, 1, 1], [], []>} : vector<8x512xf32>, vector<512x64xf32>, vector<8x64xf32> -> vector<8x64xf32>
    %c0_9 = arith.constant 0 : index
    %c0_10 = arith.constant 0 : index
    %10 = vector.load %arg5[%c0_9, %c0_10] : memref<1x64xf32, #tpu.memory_space<vmem>>, vector<1x64xf32>
    %11 = vector.broadcast %10 : vector<1x64xf32> to vector<8x64xf32>
    %12 = arith.addf %9, %11 : vector<8x64xf32>
    %c0_11 = arith.constant 0 : index
    %c0_12 = arith.constant 0 : index
    %13 = vector.load %arg6[%c0_11, %c0_12] : memref<64x64xf32, #tpu.memory_space<vmem>>, vector<64x64xf32>
    %cst_13 = arith.constant dense<0.000000e+00> : vector<8x64xf32>
    %14 = tpu.matmul %12, %13, %cst_13 {dimension_numbers = #tpu.dot_dimension_numbers<[1], [0], [0], [1], [0, 0, 1, 1], [], []>} : vector<8x64xf32>, vector<64x64xf32>, vector<8x64xf32> -> vector<8x64xf32>
    %c0_14 = arith.constant 0 : index
    %c0_15 = arith.constant 0 : index
    %15 = vector.load %arg7[%c0_14, %c0_15] : memref<1x64xf32, #tpu.memory_space<vmem>>, vector<1x64xf32>
    %16 = vector.broadcast %15 : vector<1x64xf32> to vector<8x64xf32>
    %17 = arith.addf %14, %16 : vector<8x64xf32>
    %cst_16 = arith.constant 0.000000e+00 : f32
    %18 = vector.broadcast %cst_16 : f32 to vector<8x64xf32>
    %19 = arith.maximumf %17, %18 : vector<8x64xf32>
    %c0_17 = arith.constant 0 : index
    %c0_18 = arith.constant 0 : index
    %20 = vector.load %arg8[%c0_17, %c0_18] : memref<64x64xf32, #tpu.memory_space<vmem>>, vector<64x64xf32>
    %cst_19 = arith.constant dense<0.000000e+00> : vector<8x64xf32>
    %21 = tpu.matmul %19, %20, %cst_19 {dimension_numbers = #tpu.dot_dimension_numbers<[1], [0], [0], [1], [0, 0, 1, 1], [], []>} : vector<8x64xf32>, vector<64x64xf32>, vector<8x64xf32> -> vector<8x64xf32>
    %c0_20 = arith.constant 0 : index
    %c0_21 = arith.constant 0 : index
    %22 = vector.load %arg9[%c0_20, %c0_21] : memref<1x64xf32, #tpu.memory_space<vmem>>, vector<1x64xf32>
    %23 = vector.broadcast %22 : vector<1x64xf32> to vector<8x64xf32>
    %24 = arith.addf %21, %23 : vector<8x64xf32>
    %cst_22 = arith.constant 0.000000e+00 : f32
    %25 = vector.broadcast %cst_22 : f32 to vector<8x64xf32>
    %26 = arith.maximumf %24, %25 : vector<8x64xf32>
    %c0_23 = arith.constant 0 : index
    %c0_24 = arith.constant 0 : index
    %27 = vector.load %arg10[%c0_23, %c0_24] : memref<64x64xf32, #tpu.memory_space<vmem>>, vector<64x64xf32>
    %cst_25 = arith.constant dense<0.000000e+00> : vector<8x64xf32>
    %28 = tpu.matmul %26, %27, %cst_25 {dimension_numbers = #tpu.dot_dimension_numbers<[1], [0], [0], [1], [0, 0, 1, 1], [], []>} : vector<8x64xf32>, vector<64x64xf32>, vector<8x64xf32> -> vector<8x64xf32>
    %c0_26 = arith.constant 0 : index
    %c0_27 = arith.constant 0 : index
    %29 = vector.load %arg11[%c0_26, %c0_27] : memref<1x64xf32, #tpu.memory_space<vmem>>, vector<1x64xf32>
    %30 = vector.broadcast %29 : vector<1x64xf32> to vector<8x64xf32>
    %31 = arith.addf %28, %30 : vector<8x64xf32>
    %cst_28 = arith.constant 0.000000e+00 : f32
    %32 = vector.broadcast %cst_28 : f32 to vector<8x64xf32>
    %33 = arith.maximumf %31, %32 : vector<8x64xf32>
    %c0_29 = arith.constant 0 : index
    %c0_30 = arith.constant 0 : index
    %34 = vector.load %arg12[%c0_29, %c0_30] : memref<64x64xf32, #tpu.memory_space<vmem>>, vector<64x64xf32>
    %cst_31 = arith.constant dense<0.000000e+00> : vector<8x64xf32>
    %35 = tpu.matmul %33, %34, %cst_31 {dimension_numbers = #tpu.dot_dimension_numbers<[1], [0], [0], [1], [0, 0, 1, 1], [], []>} : vector<8x64xf32>, vector<64x64xf32>, vector<8x64xf32> -> vector<8x64xf32>
    %c0_32 = arith.constant 0 : index
    %c0_33 = arith.constant 0 : index
    %36 = vector.load %arg13[%c0_32, %c0_33] : memref<1x64xf32, #tpu.memory_space<vmem>>, vector<1x64xf32>
    %37 = vector.broadcast %36 : vector<1x64xf32> to vector<8x64xf32>
    %38 = arith.addf %35, %37 : vector<8x64xf32>
    %cst_34 = arith.constant 0.000000e+00 : f32
    %39 = vector.broadcast %cst_34 : f32 to vector<8x64xf32>
    %40 = arith.maximumf %38, %39 : vector<8x64xf32>
    %c0_35 = arith.constant 0 : index
    %c0_36 = arith.constant 0 : index
    %41 = vector.load %arg14[%c0_35, %c0_36] : memref<64x128xf32, #tpu.memory_space<vmem>>, vector<64x128xf32>
    %cst_37 = arith.constant dense<0.000000e+00> : vector<8x128xf32>
    %42 = tpu.matmul %40, %41, %cst_37 {dimension_numbers = #tpu.dot_dimension_numbers<[1], [0], [0], [1], [0, 0, 1, 1], [], []>} : vector<8x64xf32>, vector<64x128xf32>, vector<8x128xf32> -> vector<8x128xf32>
    %c0_38 = arith.constant 0 : index
    %c0_39 = arith.constant 0 : index
    %43 = vector.load %arg15[%c0_38, %c0_39] : memref<1x128xf32, #tpu.memory_space<vmem>>, vector<1x128xf32>
    %44 = vector.broadcast %43 : vector<1x128xf32> to vector<8x128xf32>
    %45 = arith.addf %42, %44 : vector<8x128xf32>
    %46 = math.tanh %45 : vector<8x128xf32>
    %c0_40 = arith.constant 0 : index
    %c0_41 = arith.constant 0 : index
    %47 = vector.load %arg16[%c0_40, %c0_41] : memref<8x128xf32, #tpu.memory_space<vmem>>, vector<8x128xf32>
    tpu.vector_store %arg16[%c0_40, %c0_41], %46 {strides = array<i32>} : memref<8x128xf32, #tpu.memory_space<vmem>>, vector<8x128xf32>,
    return
  }
  func.func @transform_0(%arg0: i32) -> (i32, i32) {
    %c0_i32 = arith.constant 0 : i32
    %c0_i32_0 = arith.constant 0 : i32
    return %arg0, %c0_i32 : i32, i32
  }
  func.func @transform_1(%arg0: i32) -> (i32, i32) {
    %c0_i32 = arith.constant 0 : i32
    %c0_i32_0 = arith.constant 0 : i32
    %c0_i32_1 = arith.constant 0 : i32
    return %c0_i32, %c0_i32_0 : i32, i32
  }
  func.func @transform_2(%arg0: i32) -> (i32, i32) {
    %c0_i32 = arith.constant 0 : i32
    %c0_i32_0 = arith.constant 0 : i32
    %c0_i32_1 = arith.constant 0 : i32
    return %c0_i32, %c0_i32_0 : i32, i32
  }
  func.func @transform_3(%arg0: i32) -> (i32, i32) {
    %c0_i32 = arith.constant 0 : i32
    %c0_i32_0 = arith.constant 0 : i32
    %c0_i32_1 = arith.constant 0 : i32
    return %c0_i32, %c0_i32_0 : i32, i32
  }
  func.func @transform_4(%arg0: i32) -> (i32, i32) {
    %c0_i32 = arith.constant 0 : i32
    %c0_i32_0 = arith.constant 0 : i32
    %c0_i32_1 = arith.constant 0 : i32
    return %c0_i32, %c0_i32_0 : i32, i32
  }
  func.func @transform_5(%arg0: i32) -> (i32, i32) {
    %c0_i32 = arith.constant 0 : i32
    %c0_i32_0 = arith.constant 0 : i32
    %c0_i32_1 = arith.constant 0 : i32
    return %c0_i32, %c0_i32_0 : i32, i32
  }
  func.func @transform_6(%arg0: i32) -> (i32, i32) {
    %c0_i32 = arith.constant 0 : i32
    %c0_i32_0 = arith.constant 0 : i32
    %c0_i32_1 = arith.constant 0 : i32
    return %c0_i32, %c0_i32_0 : i32, i32
  }
  func.func @transform_7(%arg0: i32) -> (i32, i32) {
    %c0_i32 = arith.constant 0 : i32
    %c0_i32_0 = arith.constant 0 : i32
    %c0_i32_1 = arith.constant 0 : i32
    return %c0_i32, %c0_i32_0 : i32, i32
  }
  func.func @transform_8(%arg0: i32) -> (i32, i32) {
    %c0_i32 = arith.constant 0 : i32
    %c0_i32_0 = arith.constant 0 : i32
    %c0_i32_1 = arith.constant 0 : i32
    return %c0_i32, %c0_i32_0 : i32, i32
  }
  func.func @transform_9(%arg0: i32) -> (i32, i32) {
    %c0_i32 = arith.constant 0 : i32
    %c0_i32_0 = arith.constant 0 : i32
    %c0_i32_1 = arith.constant 0 : i32
    return %c0_i32, %c0_i32_0 : i32, i32
  }
  func.func @transform_10(%arg0: i32) -> (i32, i32) {
    %c0_i32 = arith.constant 0 : i32
    %c0_i32_0 = arith.constant 0 : i32
    %c0_i32_1 = arith.constant 0 : i32
    return %c0_i32, %c0_i32_0 : i32, i32
  }
  func.func @transform_11(%arg0: i32) -> (i32, i32) {
    %c0_i32 = arith.constant 0 : i32
    %c0_i32_0 = arith.constant 0 : i32
    %c0_i32_1 = arith.constant 0 : i32
    return %c0_i32, %c0_i32_0 : i32, i32
  }
  func.func @transform_12(%arg0: i32) -> (i32, i32) {
    %c0_i32 = arith.constant 0 : i32
    %c0_i32_0 = arith.constant 0 : i32
    %c0_i32_1 = arith.constant 0 : i32
    return %c0_i32, %c0_i32_0 : i32, i32
  }
  func.func @transform_13(%arg0: i32) -> (i32, i32) {
    %c0_i32 = arith.constant 0 : i32
    %c0_i32_0 = arith.constant 0 : i32
    %c0_i32_1 = arith.constant 0 : i32
    return %c0_i32, %c0_i32_0 : i32, i32
  }
  func.func @transform_14(%arg0: i32) -> (i32, i32) {
    %c0_i32 = arith.constant 0 : i32
    %c0_i32_0 = arith.constant 0 : i32
    %c0_i32_1 = arith.constant 0 : i32
    return %c0_i32, %c0_i32_0 : i32, i32
  }
  func.func @transform_15(%arg0: i32) -> (i32, i32) {
    %c0_i32 = arith.constant 0 : i32
    %c0_i32_0 = arith.constant 0 : i32
    return %arg0, %c0_i32 : i32, i32
  }
}

</mosaic_0001>

<bundles_post_ra>
// kernel: mlp_model_forward.1
= control target key start
LH: loop header
LB: loop body
LE: loop exit
PB: predicated region body
PF: predicated region fallthrough
CT: control target
= control target key end

     0   :  { %vm1489_vm0 = vmmov 0   ;;  %vm574_vm1 = vcmask 523264   ;;  %s2332_s1 = inlined_call_operand.vmem [shape: f32[256,512], index: 1, kind: input, shape index: {}]   ;;  %s2333_s0 = inlined_call_operand.vmem [shape: f32[8,256], index: 0, kind: input, shape index: {}]   ;;  %s2334_s3 = inlined_call_operand.vmem [shape: f32[512,64], index: 3, kind: input, shape index: {}]   ;;  %s2335_s2 = inlined_call_operand.vmem [shape: f32[1,512], index: 2, kind: input, shape index: {}]   ;;  %s2336_s5 = inlined_call_operand.vmem [shape: f32[64,64], index: 5, kind: input, shape index: {}]   ;;  %s2337_s7 = inlined_call_operand.vmem [shape: f32[64,64], index: 7, kind: input, shape index: {}]   ;;  %s2338_s4 = inlined_call_operand.vmem [shape: f32[1,64], index: 4, kind: input, shape index: {}]   ;;  %s2339_s9 = inlined_call_operand.vmem [shape: f32[64,64], index: 9, kind: input, shape index: {}]   ;;  %s2340_s6 = inlined_call_operand.vmem [shape: f32[1,64], index: 6, kind: input, shape index: {}]   ;;  %s2341_s11 = inlined_call_operand.vmem [shape: f32[64,64], index: 11, kind: input, shape index: {}]   ;;  %s2342_s8 = inlined_call_operand.vmem [shape: f32[1,64], index: 8, kind: input, shape index: {}]   ;;  %s2343_s13 = inlined_call_operand.vmem [shape: f32[64,128], index: 13, kind: input, shape index: {}]   ;;  %s2344_s10 = inlined_call_operand.vmem [shape: f32[1,64], index: 10, kind: input, shape index: {}]   ;;  %s2345_s12 = inlined_call_operand.vmem [shape: f32[1,64], index: 12, kind: input, shape index: {}]   ;;  %s2346_s14 = inlined_call_operand.vmem [shape: f32[1,128], index: 14, kind: input, shape index: {}]   ;;  %s2347_s15 = inlined_call_operand.vmem [shape: f32[8,128], index: 15, kind: output, shape index: {}]  }
   0x1   :  { %v53_v0 = vld [vmem:[%s2332_s1 + $0x8] sm:$0xff]  ;;  %v55_v2 = vld [vmem:[%s2332_s1 + $0x18] sm:$0xff]  ;;  %v52_v5 = vld [vmem:[%s2332_s1] sm:$0xff] }
   0x2   :  { %v57_v1 = vld [vmem:[%s2332_s1 + $0x28] sm:$0xff]  ;;  %v59_v4 = vld [vmem:[%s2332_s1 + $0x38] sm:$0xff]  ;;  %v56_v6 = vld [vmem:[%s2332_s1 + $0x20] sm:$0xff] }
   0x3   :  { %v1231_v3 = vpack.c.bf16 %v57_v1, %v53_v0  ;;  %v1295_v7 = vpack.c.bf16 %v59_v4, %v55_v2  ;;  %v1233_v8 = vpack.c.bf16 %v56_v6, %v52_v5  ;;  %v54_v9 = vld [vmem:[%s2332_s1 + $0x10] sm:$0xff]  ;;  %v61_v11 = vld [vmem:[%s2332_s1 + $0x48] sm:$0xff]  ;;  %v63_v14 = vld [vmem:[%s2332_s1 + $0x58] sm:$0xff] }
   0x4   :  { %v58_v10 = vld [vmem:[%s2332_s1 + $0x30] sm:$0xff]  ;;  %v65_v13 = vld [vmem:[%s2332_s1 + $0x68] sm:$0xff]  ;;  %v67_v15 = vld [vmem:[%s2332_s1 + $0x78] sm:$0xff] }
   0x5   :  { %1232 = vmatprep.subr.bf16.mxu0 %v1231_v3  ;;  %v1297_v12 = vpack.c.bf16 %v58_v10, %v54_v9  ;;  %1296 = vmatprep.subr.bf16.mxu1 %v1295_v7  ;;  %v1235_v16 = vpack.c.bf16 %v65_v13, %v61_v11  ;;  %v1299_v17 = vpack.c.bf16 %v67_v15, %v63_v14  ;;  %v60_v18 = vld [vmem:[%s2332_s1 + $0x40] sm:$0xff]  ;;  %v62_v20 = vld [vmem:[%s2332_s1 + $0x50] sm:$0xff]  ;;  %v69_v23 = vld [vmem:[%s2332_s1 + $0x88] sm:$0xff] }
   0x6   :  { %1234 = vmatpush1.bf16.msra.mxu0 %v1233_v8  ;;  %v64_v19 = vld [vmem:[%s2332_s1 + $0x60] sm:$0xff]  ;;  %v66_v22 = vld [vmem:[%s2332_s1 + $0x70] sm:$0xff]  ;;  %v73_v24 = vld [vmem:[%s2332_s1 + $0xa8] sm:$0xff] }
   0x7   :  { %1298 = vmatpush1.bf16.msra.mxu1 %v1297_v12  ;;  %v1237_v21 = vpack.c.bf16 %v64_v19, %v60_v18  ;;  %1236 = vmatprep.subr.bf16.mxu0 %v1235_v16  ;;  %v1301_v25 = vpack.c.bf16 %v66_v22, %v62_v20  ;;  %v1239_v26 = vpack.c.bf16 %v73_v24, %v69_v23  ;;  %v71_v27 = vld [vmem:[%s2332_s1 + $0x98] sm:$0xff]  ;;  %v68_v29 = vld [vmem:[%s2332_s1 + $0x80] sm:$0xff]  ;;  %v70_v32 = vld [vmem:[%s2332_s1 + $0x90] sm:$0xff] }
   0x8   :  { %1300 = vmatprep.subr.bf16.mxu1 %v1299_v17  ;;  %v75_v28 = vld [vmem:[%s2332_s1 + $0xb8] sm:$0xff]  ;;  %v72_v31 = vld [vmem:[%s2332_s1 + $0xa0] sm:$0xff]  ;;  %v74_v33 = vld [vmem:[%s2332_s1 + $0xb0] sm:$0xff] }
   0x9   :  { %v1303_v30 = vpack.c.bf16 %v75_v28, %v71_v27  ;;  %v1241_v34 = vpack.c.bf16 %v72_v31, %v68_v29  ;;  %v77_v35 = vld [vmem:[%s2332_s1 + $0xc8] sm:$0xff]  ;;  %v79_v37 = vld [vmem:[%s2332_s1 + $0xd8] sm:$0xff]  ;;  %v1305_v38 = vpack.c.bf16 %v74_v33, %v70_v32  ;;  %v76_v41 = vld [vmem:[%s2332_s1 + $0xc0] sm:$0xff] }
   0xa   :  { %1238 = vmatpush1.bf16.msra.mxu0 %v1237_v21  ;;  %v81_v36 = vld [vmem:[%s2332_s1 + $0xe8] sm:$0xff]  ;;  %v83_v40 = vld [vmem:[%s2332_s1 + $0xf8] sm:$0xff]  ;;  %v80_v42 = vld [vmem:[%s2332_s1 + $0xe0] sm:$0xff] }
   0xb   :  { %1302 = vmatpush1.bf16.msra.mxu1 %v1301_v25  ;;  %1240 = vmatprep.subr.bf16.mxu0 %v1239_v26  ;;  %v1243_v39 = vpack.c.bf16 %v81_v36, %v77_v35  ;;  %v1307_v43 = vpack.c.bf16 %v83_v40, %v79_v37  ;;  %v78_v44 = vld [vmem:[%s2332_s1 + $0xd0] sm:$0xff]  ;;  %v85_v46 = vld [vmem:[%s2332_s1 + $0x108] sm:$0xff]  ;;  %v87_v48 = vld [vmem:[%s2332_s1 + $0x118] sm:$0xff]  ;;  %v1245_v50 = vpack.c.bf16 %v80_v42, %v76_v41 }
   0xc   :  { %1304 = vmatprep.subr.bf16.mxu1 %v1303_v30  ;;  %v82_v45 = vld [vmem:[%s2332_s1 + $0xf0] sm:$0xff]  ;;  %v89_v47 = vld [vmem:[%s2332_s1 + $0x128] sm:$0xff]  ;;  %v91_v49 = vld [vmem:[%s2332_s1 + $0x138] sm:$0xff] }
   0xd   :  { %v1309_v51 = vpack.c.bf16 %v82_v45, %v78_v44  ;;  %v1247_v52 = vpack.c.bf16 %v89_v47, %v85_v46  ;;  %v84_v53 = vld [vmem:[%s2332_s1 + $0x100] sm:$0xff]  ;;  %v86_v55 = vld [vmem:[%s2332_s1 + $0x110] sm:$0xff]  ;;  %v1311_v56 = vpack.c.bf16 %v91_v49, %v87_v48  ;;  %v93_v58 = vld [vmem:[%s2332_s1 + $0x148] sm:$0xff] }
   0xe   :  { %1242 = vmatpush1.bf16.msra.mxu0 %v1241_v34  ;;  %v88_v54 = vld [vmem:[%s2332_s1 + $0x120] sm:$0xff]  ;;  %v90_v57 = vld [vmem:[%s2332_s1 + $0x130] sm:$0xff]  ;;  %v97_v59 = vld [vmem:[%s2332_s1 + $0x168] sm:$0xff] }
   0xf   :  { %1306 = vmatpush1.bf16.msra.mxu1 %v1305_v38  ;;  %1244 = vmatprep.subr.bf16.mxu0 %v1243_v39  ;;  %v95_v60 = vld [vmem:[%s2332_s1 + $0x158] sm:$0xff]  ;;  %v1249_v62 = vpack.c.bf16 %v88_v54, %v84_v53  ;;  %v1313_v63 = vpack.c.bf16 %v90_v57, %v86_v55  ;;  %v1251_v0 = vpack.c.bf16 %v97_v59, %v93_v58  ;;  %v92_v1 = vld [vmem:[%s2332_s1 + $0x140] sm:$0xff]  ;;  %v94_v3 = vld [vmem:[%s2332_s1 + $0x150] sm:$0xff] }
  0x10   :  { %1308 = vmatprep.subr.bf16.mxu1 %v1307_v43  ;;  %v99_v61 = vld [vmem:[%s2332_s1 + $0x178] sm:$0xff]  ;;  %v96_v2 = vld [vmem:[%s2332_s1 + $0x160] sm:$0xff]  ;;  %v98_v5 = vld [vmem:[%s2332_s1 + $0x170] sm:$0xff] }
  0x11   :  { %v1315_v4 = vpack.c.bf16 %v99_v61, %v95_v60  ;;  %v101_v6 = vld [vmem:[%s2332_s1 + $0x188] sm:$0xff]  ;;  %v103_v8 = vld [vmem:[%s2332_s1 + $0x198] sm:$0xff]  ;;  %v1253_v10 = vpack.c.bf16 %v96_v2, %v92_v1  ;;  %v1317_v11 = vpack.c.bf16 %v98_v5, %v94_v3  ;;  %v100_v13 = vld [vmem:[%s2332_s1 + $0x180] sm:$0xff] }
  0x12   :  { %1246 = vmatpush1.bf16.msra.mxu0 %v1245_v50  ;;  %v105_v7 = vld [vmem:[%s2332_s1 + $0x1a8] sm:$0xff]  ;;  %v107_v9 = vld [vmem:[%s2332_s1 + $0x1b8] sm:$0xff]  ;;  %v104_v14 = vld [vmem:[%s2332_s1 + $0x1a0] sm:$0xff] }
  0x13   :  { %1310 = vmatpush1.bf16.msra.mxu1 %v1309_v51  ;;  %1248 = vmatprep.subr.bf16.mxu0 %v1247_v52  ;;  %v1255_v12 = vpack.c.bf16 %v105_v7, %v101_v6  ;;  %v102_v15 = vld [vmem:[%s2332_s1 + $0x190] sm:$0xff]  ;;  %v1319_v16 = vpack.c.bf16 %v107_v9, %v103_v8  ;;  %v109_v18 = vld [vmem:[%s2332_s1 + $0x1c8] sm:$0xff]  ;;  %v111_v20 = vld [vmem:[%s2332_s1 + $0x1d8] sm:$0xff]  ;;  %v1257_v22 = vpack.c.bf16 %v104_v14, %v100_v13 }
  0x14   :  { %1312 = vmatprep.subr.bf16.mxu1 %v1311_v56  ;;  %v106_v17 = vld [vmem:[%s2332_s1 + $0x1b0] sm:$0xff]  ;;  %v113_v19 = vld [vmem:[%s2332_s1 + $0x1e8] sm:$0xff]  ;;  %v115_v21 = vld [vmem:[%s2332_s1 + $0x1f8] sm:$0xff] }
  0x15   :  { %v1321_v23 = vpack.c.bf16 %v106_v17, %v102_v15  ;;  %v1259_v24 = vpack.c.bf16 %v113_v19, %v109_v18  ;;  %v108_v25 = vld [vmem:[%s2332_s1 + $0x1c0] sm:$0xff]  ;;  %v110_v27 = vld [vmem:[%s2332_s1 + $0x1d0] sm:$0xff]  ;;  %v1323_v28 = vpack.c.bf16 %v115_v21, %v111_v20  ;;  %v117_v30 = vld [vmem:[%s2332_s1 + $0x208] sm:$0xff] }
  0x16   :  { %1250 = vmatpush1.bf16.msra.mxu0 %v1249_v62  ;;  %v112_v26 = vld [vmem:[%s2332_s1 + $0x1e0] sm:$0xff]  ;;  %v114_v29 = vld [vmem:[%s2332_s1 + $0x1f0] sm:$0xff]  ;;  %v121_v31 = vld [vmem:[%s2332_s1 + $0x228] sm:$0xff] }
  0x17   :  { %1314 = vmatpush1.bf16.msra.mxu1 %v1313_v63  ;;  %1252 = vmatprep.subr.bf16.mxu0 %v1251_v0  ;;  %v119_v32 = vld [vmem:[%s2332_s1 + $0x218] sm:$0xff]  ;;  %v1261_v34 = vpack.c.bf16 %v112_v26, %v108_v25  ;;  %v1325_v35 = vpack.c.bf16 %v114_v29, %v110_v27  ;;  %v1263_v36 = vpack.c.bf16 %v121_v31, %v117_v30  ;;  %v116_v37 = vld [vmem:[%s2332_s1 + $0x200] sm:$0xff]  ;;  %v118_v39 = vld [vmem:[%s2332_s1 + $0x210] sm:$0xff] }
  0x18   :  { %1316 = vmatprep.subr.bf16.mxu1 %v1315_v4  ;;  %v123_v33 = vld [vmem:[%s2332_s1 + $0x238] sm:$0xff]  ;;  %v120_v38 = vld [vmem:[%s2332_s1 + $0x220] sm:$0xff]  ;;  %v122_v41 = vld [vmem:[%s2332_s1 + $0x230] sm:$0xff] }
  0x19   :  { %v1327_v40 = vpack.c.bf16 %v123_v33, %v119_v32  ;;  %v125_v42 = vld [vmem:[%s2332_s1 + $0x248] sm:$0xff]  ;;  %v127_v44 = vld [vmem:[%s2332_s1 + $0x258] sm:$0xff]  ;;  %v1265_v46 = vpack.c.bf16 %v120_v38, %v116_v37  ;;  %v1329_v47 = vpack.c.bf16 %v122_v41, %v118_v39  ;;  %v124_v49 = vld [vmem:[%s2332_s1 + $0x240] sm:$0xff] }
  0x1a   :  { %1254 = vmatpush1.bf16.msra.mxu0 %v1253_v10  ;;  %v129_v43 = vld [vmem:[%s2332_s1 + $0x268] sm:$0xff]  ;;  %v131_v45 = vld [vmem:[%s2332_s1 + $0x278] sm:$0xff]  ;;  %v128_v50 = vld [vmem:[%s2332_s1 + $0x260] sm:$0xff] }
  0x1b   :  { %1318 = vmatpush1.bf16.msra.mxu1 %v1317_v11  ;;  %1256 = vmatprep.subr.bf16.mxu0 %v1255_v12  ;;  %v1267_v48 = vpack.c.bf16 %v129_v43, %v125_v42  ;;  %v126_v51 = vld [vmem:[%s2332_s1 + $0x250] sm:$0xff]  ;;  %v1331_v52 = vpack.c.bf16 %v131_v45, %v127_v44  ;;  %v133_v54 = vld [vmem:[%s2332_s1 + $0x288] sm:$0xff]  ;;  %v135_v56 = vld [vmem:[%s2332_s1 + $0x298] sm:$0xff]  ;;  %v1269_v58 = vpack.c.bf16 %v128_v50, %v124_v49 }
  0x1c   :  { %1320 = vmatprep.subr.bf16.mxu1 %v1319_v16  ;;  %v130_v53 = vld [vmem:[%s2332_s1 + $0x270] sm:$0xff]  ;;  %v137_v55 = vld [vmem:[%s2332_s1 + $0x2a8] sm:$0xff]  ;;  %v139_v57 = vld [vmem:[%s2332_s1 + $0x2b8] sm:$0xff] }
  0x1d   :  { %v1333_v59 = vpack.c.bf16 %v130_v53, %v126_v51  ;;  %v1271_v60 = vpack.c.bf16 %v137_v55, %v133_v54  ;;  %v132_v61 = vld [vmem:[%s2332_s1 + $0x280] sm:$0xff]  ;;  %v134_v63 = vld [vmem:[%s2332_s1 + $0x290] sm:$0xff]  ;;  %v1335_v0 = vpack.c.bf16 %v139_v57, %v135_v56  ;;  %v141_v2 = vld [vmem:[%s2332_s1 + $0x2c8] sm:$0xff] }
  0x1e   :  { %1258 = vmatpush1.bf16.msra.mxu0 %v1257_v22  ;;  %v136_v62 = vld [vmem:[%s2332_s1 + $0x2a0] sm:$0xff]  ;;  %v138_v1 = vld [vmem:[%s2332_s1 + $0x2b0] sm:$0xff]  ;;  %v145_v3 = vld [vmem:[%s2332_s1 + $0x2e8] sm:$0xff] }
  0x1f   :  { %1322 = vmatpush1.bf16.msra.mxu1 %v1321_v23  ;;  %1260 = vmatprep.subr.bf16.mxu0 %v1259_v24  ;;  %v143_v4 = vld [vmem:[%s2332_s1 + $0x2d8] sm:$0xff]  ;;  %v1273_v6 = vpack.c.bf16 %v136_v62, %v132_v61  ;;  %v140_v7 = vld [vmem:[%s2332_s1 + $0x2c0] sm:$0xff]  ;;  %v1337_v8 = vpack.c.bf16 %v138_v1, %v134_v63  ;;  %v1275_v9 = vpack.c.bf16 %v145_v3, %v141_v2  ;;  %v142_v11 = vld [vmem:[%s2332_s1 + $0x2d0] sm:$0xff] }
  0x20   :  { %1324 = vmatprep.subr.bf16.mxu1 %v1323_v28  ;;  %v147_v5 = vld [vmem:[%s2332_s1 + $0x2f8] sm:$0xff]  ;;  %v144_v10 = vld [vmem:[%s2332_s1 + $0x2e0] sm:$0xff]  ;;  %v146_v12 = vld [vmem:[%s2332_s1 + $0x2f0] sm:$0xff] }
  0x21   :  { %v1339_v13 = vpack.c.bf16 %v147_v5, %v143_v4  ;;  %v149_v14 = vld [vmem:[%s2332_s1 + $0x308] sm:$0xff]  ;;  %v151_v17 = vld [vmem:[%s2332_s1 + $0x318] sm:$0xff]  ;;  %v1277_v19 = vpack.c.bf16 %v144_v10, %v140_v7  ;;  %v1341_v20 = vpack.c.bf16 %v146_v12, %v142_v11  ;;  %v148_v22 = vld [vmem:[%s2332_s1 + $0x300] sm:$0xff] }
  0x22   :  { %1262 = vmatpush1.bf16.msra.mxu0 %v1261_v34  ;;  %v153_v15 = vld [vmem:[%s2332_s1 + $0x328] sm:$0xff]  ;;  %v155_v18 = vld [vmem:[%s2332_s1 + $0x338] sm:$0xff]  ;;  %v152_v23 = vld [vmem:[%s2332_s1 + $0x320] sm:$0xff] }
  0x23   :  { %1326 = vmatpush1.bf16.msra.mxu1 %v1325_v35  ;;  %1264 = vmatprep.subr.bf16.mxu0 %v1263_v36  ;;  %v51_v16 = vld [vmem:[%s2333_s0 + $0x8] sm:$0xff]  ;;  %v1279_v21 = vpack.c.bf16 %v153_v15, %v149_v14  ;;  %v150_v24 = vld [vmem:[%s2332_s1 + $0x310] sm:$0xff]  ;;  %v1343_v25 = vpack.c.bf16 %v155_v18, %v151_v17  ;;  %v159_v29 = vld [vmem:[%s2332_s1 + $0x358] sm:$0xff]  ;;  %v1281_v31 = vpack.c.bf16 %v152_v23, %v148_v22 }
  0x24   :  { %1328 = vmatprep.subr.bf16.mxu1 %v1327_v40  ;;  %266 = vmatprep.mubr.f32.mxu0 %v51_v16  ;;  %v154_v26 = vld [vmem:[%s2332_s1 + $0x330] sm:$0xff]  ;;  %v157_v27 = vld [vmem:[%s2332_s1 + $0x348] sm:$0xff]  ;;  %v163_v30 = vld [vmem:[%s2332_s1 + $0x378] sm:$0xff] }
  0x25   :  { %337 = vmatprep.mubr.f32.mxu1 %v51_v16  ;;  %v161_v28 = vld [vmem:[%s2332_s1 + $0x368] sm:$0xff]  ;;  %v1345_v32 = vpack.c.bf16 %v154_v26, %v150_v24  ;;  %v156_v34 = vld [vmem:[%s2332_s1 + $0x340] sm:$0xff]  ;;  %v158_v36 = vld [vmem:[%s2332_s1 + $0x350] sm:$0xff]  ;;  %v1347_v37 = vpack.c.bf16 %v163_v30, %v159_v29 }
  0x26   :  { %1266 = vmatpush1.bf16.msra.mxu0 %v1265_v46  ;;  %v1283_v33 = vpack.c.bf16 %v161_v28, %v157_v27  ;;  %v160_v35 = vld [vmem:[%s2332_s1 + $0x360] sm:$0xff]  ;;  %v162_v38 = vld [vmem:[%s2332_s1 + $0x370] sm:$0xff]  ;;  %v165_v39 = vld [vmem:[%s2332_s1 + $0x388] sm:$0xff] }
  0x27   :  { %1330 = vmatpush1.bf16.msra.mxu1 %v1329_v47  ;;  %1268 = vmatprep.subr.bf16.mxu0 %v1267_v48  ;;  %v169_v40 = vld [vmem:[%s2332_s1 + $0x3a8] sm:$0xff]  ;;  %v167_v41 = vld [vmem:[%s2332_s1 + $0x398] sm:$0xff]  ;;  %v1285_v43 = vpack.c.bf16 %v160_v35, %v156_v34  ;;  %v1349_v44 = vpack.c.bf16 %v162_v38, %v158_v36  ;;  %v164_v46 = vld [vmem:[%s2332_s1 + $0x380] sm:$0xff] }
  0x28   :  { %1332 = vmatprep.subr.bf16.mxu1 %v1331_v52  ;;  %v171_v42 = vld [vmem:[%s2332_s1 + $0x3b8] sm:$0xff]  ;;  %v1287_v45 = vpack.c.bf16 %v169_v40, %v165_v39  ;;  %v168_v47 = vld [vmem:[%s2332_s1 + $0x3a0] sm:$0xff]  ;;  %v166_v48 = vld [vmem:[%s2332_s1 + $0x390] sm:$0xff] }
  0x29   :  { %v1351_v49 = vpack.c.bf16 %v171_v42, %v167_v41  ;;  %v170_v50 = vld [vmem:[%s2332_s1 + $0x3b0] sm:$0xff]  ;;  %v173_v51 = vld [vmem:[%s2332_s1 + $0x3c8] sm:$0xff]  ;;  %v175_v53 = vld [vmem:[%s2332_s1 + $0x3d8] sm:$0xff]  ;;  %v1289_v55 = vpack.c.bf16 %v168_v47, %v164_v46 }
  0x2a   :  { %1270 = vmatpush1.bf16.msra.mxu0 %v1269_v58  ;;  %v177_v52 = vld [vmem:[%s2332_s1 + $0x3e8] sm:$0xff]  ;;  %v179_v54 = vld [vmem:[%s2332_s1 + $0x3f8] sm:$0xff]  ;;  %v1353_v56 = vpack.c.bf16 %v170_v50, %v166_v48  ;;  %v172_v58 = vld [vmem:[%s2332_s1 + $0x3c0] sm:$0xff] }
  0x2b   :  { %1334 = vmatpush1.bf16.msra.mxu1 %v1333_v59  ;;  %1272 = vmatprep.subr.bf16.mxu0 %v1271_v60  ;;  %v1291_v57 = vpack.c.bf16 %v177_v52, %v173_v51  ;;  %v176_v59 = vld [vmem:[%s2332_s1 + $0x3e0] sm:$0xff]  ;;  %v174_v60 = vld [vmem:[%s2332_s1 + $0x3d0] sm:$0xff]  ;;  %v1355_v61 = vpack.c.bf16 %v179_v54, %v175_v53  ;;  %v397_v2 = vld [vmem:[%s2334_s3 + $0x188] sm:$0xff] }
  0x2c   :  { %1336 = vmatprep.subr.bf16.mxu1 %v1335_v0  ;;  %v178_v62 = vld [vmem:[%s2332_s1 + $0x3f0] sm:$0xff]  ;;  %v364_v63 = vld [vmem:[%s2334_s3 + $0x80] sm:$0xff]  ;;  %v365_v0 = vld [vmem:[%s2334_s3 + $0x88] sm:$0xff]  ;;  %v1293_v3 = vpack.c.bf16 %v176_v59, %v172_v58 }
  0x2d   :  { %v396_v1 = vld [vmem:[%s2334_s3 + $0x180] sm:$0xff]  ;;  %v1357_v4 = vpack.c.bf16 %v178_v62, %v174_v60  ;;  %v1359_v5 = vpack.c.bf16 %v365_v0, %v364_v63  ;;  %v349_v7 = vld [vmem:[%s2334_s3 + $0x8] sm:$0xff]  ;;  %v366_v11 = vld [vmem:[%s2334_s3 + $0x90] sm:$0xff] }
  0x2e   :  { %1274 = vmatpush1.bf16.msra.mxu0 %v1273_v6  ;;  %v348_v6 = vld [vmem:[%s2334_s3] sm:$0xff]  ;;  %v381_v10 = vld [vmem:[%s2334_s3 + $0x108] sm:$0xff]  ;;  %v367_v12 = vld [vmem:[%s2334_s3 + $0x98] sm:$0xff] }
  0x2f   :  { %1338 = vmatpush1.bf16.msra.mxu1 %v1337_v8  ;;  %1276 = vmatprep.subr.bf16.mxu0 %v1275_v9  ;;  %v380_v8 = vld [vmem:[%s2334_s3 + $0x100] sm:$0xff]  ;;  %v1391_v9 = vpack.c.bf16 %v397_v2, %v396_v1  ;;  %v399_v14 = vld [vmem:[%s2334_s3 + $0x198] sm:$0xff]  ;;  %v1361_v16 = vpack.c.bf16 %v349_v7, %v348_v6  ;;  %v1363_v18 = vpack.c.bf16 %v367_v12, %v366_v11  ;;  %v401_v27 = vld [vmem:[%s2334_s3 + $0x1a8] sm:$0xff] }
  0x30   :  { %1340 = vmatprep.subr.bf16.mxu1 %v1339_v13  ;;  %v398_v13 = vld [vmem:[%s2334_s3 + $0x190] sm:$0xff]  ;;  %v50_v15 = vld [vmem:[%s2333_s0] sm:$0xff]  ;;  %v1393_v17 = vpack.c.bf16 %v381_v10, %v380_v8  ;;  %v383_v23 = vld [vmem:[%s2334_s3 + $0x118] sm:$0xff] }
  0x31   :  { %v1395_v22 = vpack.c.bf16 %v399_v14, %v398_v13  ;;  %v368_v24 = vld [vmem:[%s2334_s3 + $0xa0] sm:$0xff]  ;;  %v385_v35 = vld [vmem:[%s2334_s3 + $0x128] sm:$0xff]  ;;  %v370_v36 = vld [vmem:[%s2334_s3 + $0xb0] sm:$0xff] }
  0x32   :  { %1278 = vmatpush1.bf16.msra.mxu0 %v1277_v19  ;;  %v350_v19 = vld [vmem:[%s2334_s3 + $0x10] sm:$0xff]  ;;  %v400_v26 = vld [vmem:[%s2334_s3 + $0x1a0] sm:$0xff]  ;;  %v403_v39 = vld [vmem:[%s2334_s3 + $0x1b8] sm:$0xff] }
  0x33   :  { %1342 = vmatpush1.bf16.msra.mxu1 %v1341_v20  ;;  %1280 = vmatprep.subr.bf16.mxu0 %v1279_v21  ;;  %v351_v20 = vld [vmem:[%s2334_s3 + $0x18] sm:$0xff]  ;;  %v382_v21 = vld [vmem:[%s2334_s3 + $0x110] sm:$0xff]  ;;  %v1399_v34 = vpack.c.bf16 %v401_v27, %v400_v26  ;;  %v372_v48 = vld [vmem:[%s2334_s3 + $0xc0] sm:$0xff] }
  0x34   :  { %1344 = vmatprep.subr.bf16.mxu1 %v1343_v25  ;;  %v369_v25 = vld [vmem:[%s2334_s3 + $0xa8] sm:$0xff]  ;;  %v1365_v28 = vpack.c.bf16 %v351_v20, %v350_v19  ;;  %v1397_v29 = vpack.c.bf16 %v383_v23, %v382_v21  ;;  %v402_v38 = vld [vmem:[%s2334_s3 + $0x1b0] sm:$0xff]  ;;  %v387_v47 = vld [vmem:[%s2334_s3 + $0x138] sm:$0xff] }
  0x35   :  { %v1367_v30 = vpack.c.bf16 %v369_v25, %v368_v24  ;;  %v1403_v46 = vpack.c.bf16 %v403_v39, %v402_v38  ;;  %v404_v50 = vld [vmem:[%s2334_s3 + $0x1c0] sm:$0xff]  ;;  %v405_v51 = vld [vmem:[%s2334_s3 + $0x1c8] sm:$0xff]  ;;  %v374_v60 = vld [vmem:[%s2334_s3 + $0xd0] sm:$0xff] }
  0x36   :  { %1282 = vmatpush1.bf16.msra.mxu0 %v1281_v31  ;;  %v352_v31 = vld [vmem:[%s2334_s3 + $0x20] sm:$0xff]  ;;  %v1407_v58 = vpack.c.bf16 %v405_v51, %v404_v50  ;;  %v389_v59 = vld [vmem:[%s2334_s3 + $0x148] sm:$0xff]  ;;  %v406_v62 = vld [vmem:[%s2334_s3 + $0x1d0] sm:$0xff] }
  0x37   :  { %1346 = vmatpush1.bf16.msra.mxu1 %v1345_v32  ;;  %1284 = vmatprep.subr.bf16.mxu0 %v1283_v33  ;;  %v353_v32 = vld [vmem:[%s2334_s3 + $0x28] sm:$0xff]  ;;  %v384_v33 = vld [vmem:[%s2334_s3 + $0x120] sm:$0xff]  ;;  %v407_v63 = vld [vmem:[%s2334_s3 + $0x1d8] sm:$0xff] }
  0x38   :  { %1348 = vmatprep.subr.bf16.mxu1 %v1347_v37  ;;  %v371_v37 = vld [vmem:[%s2334_s3 + $0xb8] sm:$0xff]  ;;  %v1369_v40 = vpack.c.bf16 %v353_v32, %v352_v31  ;;  %v1401_v41 = vpack.c.bf16 %v385_v35, %v384_v33  ;;  %v1411_v6 = vpack.c.bf16 %v407_v63, %v406_v62  ;;  %v376_v8 = vld [vmem:[%s2334_s3 + $0xe0] sm:$0xff]  ;;  %v409_v11 = vld [vmem:[%s2334_s3 + $0x1e8] sm:$0xff]  ;;  %v182_v35 = vlaneseq }
  0x39   :  { %v1371_v42 = vpack.c.bf16 %v371_v37, %v370_v36  ;;  %v391_v7 = vld [vmem:[%s2334_s3 + $0x158] sm:$0xff]  ;;  %v408_v10 = vld [vmem:[%s2334_s3 + $0x1e0] sm:$0xff]  ;;  %v393_v20 = vld [vmem:[%s2334_s3 + $0x168] sm:$0xff] }
  0x3a   :  { %1286 = vmatpush1.bf16.msra.mxu0 %v1285_v43  ;;  %v354_v43 = vld [vmem:[%s2334_s3 + $0x30] sm:$0xff]  ;;  %v379_v23 = vld [vmem:[%s2334_s3 + $0xf8] sm:$0xff]  ;;  %v183_v36 = vshrl.u32 %v182_v35, 7  ;;  %v180_v38 = vld [vmem:[%s2335_s2] sm:$0xf] }
  0x3b   :  { %1350 = vmatpush1.bf16.msra.mxu1 %v1349_v44  ;;  %1288 = vmatprep.subr.bf16.mxu0 %v1287_v45  ;;  %v355_v44 = vld [vmem:[%s2334_s3 + $0x38] sm:$0xff]  ;;  %v386_v45 = vld [vmem:[%s2334_s3 + $0x130] sm:$0xff]  ;;  %v559_v50 = vld [vmem:[%s2336_s5] sm:$0xff] }
  0x3c   :  { %1352 = vmatprep.subr.bf16.mxu1 %v1351_v49  ;;  %v373_v49 = vld [vmem:[%s2334_s3 + $0xc8] sm:$0xff]  ;;  %v1373_v52 = vpack.c.bf16 %v355_v44, %v354_v43  ;;  %v1405_v53 = vpack.c.bf16 %v387_v47, %v386_v45  ;;  %v410_v24 = vld [vmem:[%s2334_s3 + $0x1f0] sm:$0xff]  ;;  %v411_v26 = vld [vmem:[%s2334_s3 + $0x1f8] sm:$0xff]  ;;  %v184_v37 = vsub.s32 0, %v183_v36  ;;  %v192_v39 = vsub.s32 2, %v183_v36 }
  0x3d   :  { %v1375_v54 = vpack.c.bf16 %v373_v49, %v372_v48  ;;  %v362_v27 = vld [vmem:[%s2334_s3 + $0x70] sm:$0xff]  ;;  %v395_v32 = vld [vmem:[%s2334_s3 + $0x178] sm:$0xff]  ;;  %v560_v51 = vld [vmem:[%s2336_s5 + $0x8] sm:$0xff] }
  0x3e   :  { %1290 = vmatpush1.bf16.msra.mxu0 %v1289_v55  ;;  %v356_v55 = vld [vmem:[%s2334_s3 + $0x40] sm:$0xff]  ;;  %v394_v31 = vld [vmem:[%s2334_s3 + $0x170] sm:$0xff]  ;;  %v193_v43 = vrot.slane %v180_v38, %v192_v39  ;;  %v562_v62 = vld [vmem:[%s2336_s5 + $0x18] sm:$0xff] }
  0x3f   :  { %1354 = vmatpush1.bf16.msra.mxu1 %v1353_v56  ;;  %1292 = vmatprep.subr.bf16.mxu0 %v1291_v57  ;;  %v357_v56 = vld [vmem:[%s2334_s3 + $0x48] sm:$0xff]  ;;  %v388_v57 = vld [vmem:[%s2334_s3 + $0x140] sm:$0xff]  ;;  %v1421_v33 = vpack.c.bf16 %v395_v32, %v394_v31  ;;  %v741_v32 = vld [vmem:[%s2339_s9 + $0x18] sm:$0xff] }
  0x40   :  { %1356 = vmatprep.subr.bf16.mxu1 %v1355_v61  ;;  %v375_v61 = vld [vmem:[%s2334_s3 + $0xd8] sm:$0xff]  ;;  %v1377_v0 = vpack.c.bf16 %v357_v56, %v356_v55  ;;  %v1409_v1 = vpack.c.bf16 %v389_v59, %v388_v57  ;;  %v742_v35 = vld [vmem:[%s2339_s9 + $0x20] sm:$0xff] }
  0x41   :  { %v1379_v2 = vpack.c.bf16 %v375_v61, %v374_v60  ;;  %v561_v61 = vld [vmem:[%s2336_s5 + $0x10] sm:$0xff] }
  0x42   :  { %1294 = vmatpush1.bf16.msra.mxu0 %v1293_v3  ;;  %v358_v3 = vld [vmem:[%s2334_s3 + $0x50] sm:$0xff]  ;;  %v1427_v63 = vpack.c.bf16 %v562_v62, %v561_v61  ;;  %v834_v61 = vld [vmem:[%s2341_s11 + $0x38] sm:$0xff] }
  0x43   :  { %1358 = vmatpush1.bf16.msra.mxu1 %v1357_v4  ;;  %1360 = vmatprep.subr.bf16.mxu0 %v1359_v5  ;;  %v359_v4 = vld [vmem:[%s2334_s3 + $0x58] sm:$0xff]  ;;  %v390_v5 = vld [vmem:[%s2334_s3 + $0x150] sm:$0xff] }
  0x44   :  { %1392 = vmatprep.subr.bf16.mxu1 %v1391_v9  ;;  %v377_v9 = vld [vmem:[%s2334_s3 + $0xe8] sm:$0xff]  ;;  %v1381_v12 = vpack.c.bf16 %v359_v4, %v358_v3  ;;  %v1413_v13 = vpack.c.bf16 %v391_v7, %v390_v5  ;;  %v565_v3 = vld [vmem:[%s2336_s5 + $0x30] sm:$0xff]  ;;  %v566_v4 = vld [vmem:[%s2336_s5 + $0x38] sm:$0xff] }
  0x45   :  { %267 = vmatmul.mubr.f32.vlgmr.msra.gmra.mrb[0].mxu0 %v50_v15  ;;  %v1383_v14 = vpack.c.bf16 %v377_v9, %v376_v8  ;;  %v1433_v5 = vpack.c.bf16 %v566_v4, %v565_v3  ;;  %v649_v7 = vld [vmem:[%s2337_s7] sm:$0xff]  ;;  %v650_v8 = vld [vmem:[%s2337_s7 + $0x8] sm:$0xff]  ;;  %v651_v9 = vld [vmem:[%s2337_s7 + $0x10] sm:$0xff] }
  0x46   :  { %338 = vmatmul.mubr.f32.vlgmr.msra.gmra.mrb[0].mxu1 %v50_v15  ;;  %1362 = vmatpush3.bf16.msra.mxu0 %v1361_v16  ;;  %v1415_v15 = vpack.c.bf16 %v409_v11, %v408_v10  ;;  %v360_v16 = vld [vmem:[%s2334_s3 + $0x60] sm:$0xff]  ;;  %v1436_v10 = vpack.c.bf16 %v650_v8, %v649_v7  ;;  %v652_v11 = vld [vmem:[%s2337_s7 + $0x18] sm:$0xff] }
  0x47   :  { %1394 = vmatpush3.bf16.msra.mxu1 %v1393_v17  ;;  %1364 = vmatprep.subr.bf16.mxu0 %v1363_v18  ;;  %v361_v17 = vld [vmem:[%s2334_s3 + $0x68] sm:$0xff]  ;;  %v392_v18 = vld [vmem:[%s2334_s3 + $0x160] sm:$0xff]  ;;  %v919_v3 = vld [vmem:[%s2343_s13 + $0x18] sm:$0xff] }
  0x48   :  { %1396 = vmatprep.subr.bf16.mxu1 %v1395_v22  ;;  %v1385_v19 = vpack.c.bf16 %v361_v17, %v360_v16  ;;  %v1417_v21 = vpack.c.bf16 %v393_v20, %v392_v18  ;;  %v378_v22 = vld [vmem:[%s2334_s3 + $0xf0] sm:$0xff]  ;;  %v1010_v18 = vld [vmem:[%s2338_s4] ss:$0 sm:$0xff] }
  0x49   :  { %v1387_v25 = vpack.c.bf16 %v379_v23, %v378_v22  ;;  %v1015_v8 = vld [vmem:[%s2344_s10] ss:$0 sm:$0xff] }
  0x4a   :  { %1366 = vmatpush3.bf16.msra.mxu0 %v1365_v28  ;;  %v363_v28 = vld [vmem:[%s2334_s3 + $0x78] sm:$0xff] }
  0x4b   :  { %1398 = vmatpush3.bf16.msra.mxu1 %v1397_v29  ;;  %1368 = vmatprep.subr.bf16.mxu0 %v1367_v30  ;;  %v1419_v29 = vpack.c.bf16 %v411_v26, %v410_v24  ;;  %v1389_v30 = vpack.c.bf16 %v363_v28, %v362_v27  ;;  %v656_v26 = vld [vmem:[%s2337_s7 + $0x38] sm:$0xff]  ;;  %v738_v28 = vld [vmem:[%s2339_s9] sm:$0xff] }
  0x4c   :  { %1400 = vmatprep.subr.bf16.mxu1 %v1399_v34  ;;  %v1488_v34 = vmov 0.0|0.0  }
  0x4e   :  { %1370 = vmatpush3.bf16.msra.mxu0 %v1369_v40  ;;  %v188_v40 = vsub.s32 1, %v183_v36 }
  0x4f   :  { %1402 = vmatpush3.bf16.msra.mxu1 %v1401_v41  ;;  %1372 = vmatprep.subr.bf16.mxu0 %v1371_v42  ;;  %v196_v41 = vsub.s32 3, %v183_v36  ;;  %v185_v42 = vrot.slane %v180_v38, %v184_v37  ;;  %v743_v36 = vld [vmem:[%s2339_s9 + $0x28] sm:$0xff] }
  0x50   :  { %1404 = vmatprep.subr.bf16.mxu1 %v1403_v46  ;;  %v189_v44 = vrot.slane %v180_v38, %v188_v40  ;;  %v1454_v37 = vpack.c.bf16 %v743_v36, %v742_v35 }
  0x51   :  { %v197_v45 = vrot.slane %v180_v38, %v196_v41  ;;  %v1011_v38 = vld [vmem:[%s2340_s6] ss:$0 sm:$0xff] }
  0x52   :  { %1374 = vmatpush3.bf16.msra.mxu0 %v1373_v52 }
  0x53   :  { %1406 = vmatpush3.bf16.msra.mxu1 %v1405_v53  ;;  %1376 = vmatprep.subr.bf16.mxu0 %v1375_v54 }
  0x54   :  { %1408 = vmatprep.subr.bf16.mxu1 %v1407_v58  ;;  %v1424_v58 = vpack.c.bf16 %v560_v51, %v559_v50  ;;  %v830_v50 = vld [vmem:[%s2341_s11 + $0x18] sm:$0xff] }
  0x56   :  { %1378 = vmatpush3.bf16.msra.mxu0 %v1377_v0  ;;  %v563_v0 = vld [vmem:[%s2336_s5 + $0x20] sm:$0xff] }
  0x57   :  { %1410 = vmatpush3.bf16.msra.mxu1 %v1409_v1  ;;  %1380 = vmatprep.subr.bf16.mxu0 %v1379_v2  ;;  %v564_v1 = vld [vmem:[%s2336_s5 + $0x28] sm:$0xff] }
  0x58   :  { %1412 = vmatprep.subr.bf16.mxu1 %v1411_v6  ;;  %v1430_v2 = vpack.c.bf16 %v564_v1, %v563_v0  ;;  %v1490_v6 = vmov 0.0   ;;  %v917_v0 = vld [vmem:[%s2343_s13 + $0x8] sm:$0xff]  ;;  %v918_v1 = vld [vmem:[%s2343_s13 + $0x10] sm:$0xff] }
  0x59   :  { %v1475_v4 = vpack.c.bf16 %v919_v3, %v918_v1 }
  0x5a   :  { %1382 = vmatpush3.bf16.msra.mxu0 %v1381_v12  ;;  %v1439_v12 = vpack.c.bf16 %v652_v11, %v651_v9 }
  0x5b   :  { %1414 = vmatpush3.bf16.msra.mxu1 %v1413_v13  ;;  %1384 = vmatprep.subr.bf16.mxu0 %v1383_v14  ;;  %v653_v13 = vld [vmem:[%s2337_s7 + $0x20] sm:$0xff]  ;;  %v654_v14 = vld [vmem:[%s2337_s7 + $0x28] sm:$0xff] }
  0x5c   :  { %1416 = vmatprep.subr.bf16.mxu1 %v1415_v15  ;;  %v1442_v15 = vpack.c.bf16 %v654_v14, %v653_v13  ;;  %v922_v13 = vld [vmem:[%s2343_s13 + $0x30] sm:$0xff]  ;;  %v923_v14 = vld [vmem:[%s2343_s13 + $0x38] sm:$0xff] }
  0x5e   :  { %1386 = vmatpush3.bf16.msra.mxu0 %v1385_v19 }
  0x5f   :  { %1418 = vmatpush3.bf16.msra.mxu1 %v1417_v21  ;;  %1388 = vmatprep.subr.bf16.mxu0 %v1387_v25  ;;  %v655_v25 = vld [vmem:[%s2337_s7 + $0x30] sm:$0xff] }
  0x60   :  { %1420 = vmatprep.subr.bf16.mxu1 %v1419_v29  ;;  %v1445_v27 = vpack.c.bf16 %v656_v26, %v655_v25  ;;  %v739_v29 = vld [vmem:[%s2339_s9 + $0x8] sm:$0xff] }
  0x61   :  { %v1448_v31 = vpack.c.bf16 %v739_v29, %v738_v28 }
  0x62   :  { %1390 = vmatpush3.bf16.msra.mxu0 %v1389_v30  ;;  %v740_v30 = vld [vmem:[%s2339_s9 + $0x10] sm:$0xff] }
  0x63   :  { %1422 = vmatpush3.bf16.msra.mxu1 %v1421_v33  ;;  %1423 = vmatprep.subr.bf16.mxu0 %v1488_v34  ;;  %v1451_v33 = vpack.c.bf16 %v741_v32, %v740_v30 }
  0x64   :  { %1435 = vmatprep.subr.bf16.mxu1 %v1488_v34 }
 0x118   :  { %v268_v46 = vpop.f32.mrb[0].mxu0 }
 0x119   :  { %v269_v47 = vadd.f32 %v268_v46, %v185_v42  ;;  %v339_v48 = vpop.f32.mrb[0].mxu1  ;;  %v270_v49 = vpop.f32.mrb[1].mxu0  ;;  %v827_v46 = vld [vmem:[%s2341_s11] sm:$0xff] }
 0x11a   :  { %v340_v52 = vadd.f32 %v339_v48, %v193_v43  ;;  %v271_v53 = vadd.f32 %v270_v49, %v189_v44  ;;  %v341_v54 = vpop.f32.mrb[1].mxu1  ;;  %v744_v43 = vld [vmem:[%s2339_s9 + $0x30] sm:$0xff]  ;;  %v745_v44 = vld [vmem:[%s2339_s9 + $0x38] sm:$0xff] }
 0x11b   :  { %v342_v55 = vadd.f32 %v341_v54, %v197_v45  ;;  %v344_v59 = vmax.f32 %v269_v47, 0.0  ;;  %v1457_v45 = vpack.c.bf16 %v745_v44, %v744_v43  ;;  %v828_v47 = vld [vmem:[%s2341_s11 + $0x8] sm:$0xff]  ;;  %v829_v48 = vld [vmem:[%s2341_s11 + $0x10] sm:$0xff] }
 0x11c   :  { %v346_v56 = vmax.f32 %v340_v52, 0.0  ;;  %v345_v57 = vmax.f32 %v271_v53, 0.0  ;;  %v1460_v49 = vpack.c.bf16 %v828_v47, %v827_v46  ;;  %v1463_v51 = vpack.c.bf16 %v830_v50, %v829_v48  ;;  %v831_v52 = vld [vmem:[%s2341_s11 + $0x20] sm:$0xff]  ;;  %v832_v53 = vld [vmem:[%s2341_s11 + $0x28] sm:$0xff] }
 0x11d   :  { %v347_v60 = vmax.f32 %v342_v55, 0.0  ;;  %v1466_v54 = vpack.c.bf16 %v832_v53, %v831_v52  ;;  %v1013_v55 = vld [vmem:[%s2342_s8] ss:$0 sm:$0xff] }
 0x11e   :  { %483 = vmatprep.mubr.f32.mxu0 %v345_v57 }
 0x11f   :  { %553 = vmatprep.mubr.f32.mxu1 %v347_v60  ;;  %484 = vmatmul.mubr.f32.vlgmr.msra.gmra.mrb[2].mxu0 %v344_v59  ;;  %v833_v60 = vld [vmem:[%s2341_s11 + $0x30] sm:$0xff] }
 0x120   :  { %554 = vmatmul.mubr.f32.vlgmr.msra.gmra.mrb[2].mxu1 %v346_v56  ;;  %1425 = vmatpush3.bf16.msra.mxu0 %v1424_v58  ;;  %v1469_v62 = vpack.c.bf16 %v834_v61, %v833_v60 }
 0x121   :  { %1426 = vmatprep.subr.bf16.mxu0 %v1488_v34  ;;  %1152 = vmatprep.mubr.msk.f32.mxu0 %vm1489_vm0, %v1490_v6 }
 0x122   :  { %1171 = vmatprep.mubr.msk.f32.mxu1 %vm1489_vm0, %v1490_v6  ;;  %1437 = vmatpush3.bf16.msra.mxu1 %v1436_v10 }
 0x123   :  { %1438 = vmatprep.subr.bf16.mxu1 %v1488_v34 }
 0x124   :  { %1428 = vmatpush3.bf16.msra.mxu0 %v1427_v63  ;;  %v916_v63 = vld [vmem:[%s2343_s13] sm:$0xff] }
 0x125   :  { %1429 = vmatprep.subr.bf16.mxu0 %v1488_v34 }
 0x126   :  { %1440 = vmatpush3.bf16.msra.mxu1 %v1439_v12 }
 0x127   :  { %1441 = vmatprep.subr.bf16.mxu1 %v1488_v34 }
 0x128   :  { %1431 = vmatpush3.bf16.msra.mxu0 %v1430_v2  ;;  %v1472_v2 = vpack.c.bf16 %v917_v0, %v916_v63 }
 0x129   :  { %1432 = vmatprep.subr.bf16.mxu0 %v1488_v34 }
 0x12a   :  { %1443 = vmatpush3.bf16.msra.mxu1 %v1442_v15  ;;  %v1481_v15 = vpack.c.bf16 %v923_v14, %v922_v13 }
 0x12b   :  { %1444 = vmatprep.subr.bf16.mxu1 %v1488_v34 }
 0x12c   :  { %1434 = vmatpush3.bf16.msra.mxu0 %v1433_v5  ;;  %v920_v5 = vld [vmem:[%s2343_s13 + $0x20] sm:$0xff] }
 0x12d   :  { %1447 = vmatprep.subr.bf16.mxu0 %v1488_v34 }
 0x12e   :  { %1446 = vmatpush3.bf16.msra.mxu1 %v1445_v27 }
 0x12f   :  { %1459 = vmatprep.subr.bf16.mxu1 %v1488_v34 }
 0x1f2   :  { %v1053_v16 = vpop.f32.mrb[2].mxu0 }
 0x1f3   :  { %v1088_v17 = vpop.f32.mrb[2].mxu1  ;;  %v1054_v19 = vpop.f32.mrb[3].mxu0 }
 0x1f4   :  { %v1055_v20 = vadd.f32 %v1054_v19, %v1053_v16  ;;  %v1089_v21 = vpop.f32.mrb[3].mxu1 }
 0x1f5   :  { %v1090_v22 = vadd.f32 %v1089_v21, %v1088_v17 }
 0x1f6   :  { %v486_v23 = vadd.f32 %v1055_v20, %v1010_v18  ;;  %v1019_v20 = vld [vmem:[%s2346_s14] ss:$0 sm:$0xff] }
 0x1f8   :  { %v556_v24 = vadd.f32 %v1090_v22, %v486_v23 }
 0x1fa   :  { %1153 = vmatmul.mubr.msk.f32.vlgmr.msra.gmra.mrb[4].mxu0 %vm574_vm1, %v556_v24 }
 0x1fb   :  { %1190 = vmatprep.mubr.msk.f32.mxu0 %vm1489_vm0, %v1490_v6  ;;  %1449 = vmatpush3.bf16.msra.mxu0 %v1448_v31 }
 0x1fc   :  { %1450 = vmatprep.subr.bf16.mxu0 %v1488_v34 }
 0x1ff   :  { %1452 = vmatpush3.bf16.msra.mxu0 %v1451_v33 }
 0x200   :  { %1453 = vmatprep.subr.bf16.mxu0 %v1488_v34 }
 0x203   :  { %1455 = vmatpush3.bf16.msra.mxu0 %v1454_v37 }
 0x204   :  { %1456 = vmatprep.subr.bf16.mxu0 %v1488_v34 }
 0x207   :  { %1458 = vmatpush3.bf16.msra.mxu0 %v1457_v45 }
 0x208   :  { %1471 = vmatprep.subr.bf16.mxu0 %v1488_v34 }
 0x2cd   :  { %v644_v39 = vpop.f32.mrb[4].mxu0 }
 0x2ce   :  { %v645_v40 = vadd.f32 %v1011_v38, %v644_v39  ;;  %v1154_v41 = vpop.f32.mrb[5].mxu0 }
 0x2d0   :  { %v648_v42 = vmax.f32 %v645_v40, 0.0 }
 0x2d2   :  { %1172 = vmatmul.mubr.msk.f32.vlgmr.msra.gmra.mrb[4].mxu1 %vm574_vm1, %v648_v42 }
 0x2d3   :  { %1209 = vmatprep.mubr.msk.f32.mxu1 %vm1489_vm0, %v1490_v6  ;;  %1461 = vmatpush3.bf16.msra.mxu1 %v1460_v49 }
 0x2d4   :  { %1462 = vmatprep.subr.bf16.mxu1 %v1488_v34 }
 0x2d7   :  { %1464 = vmatpush3.bf16.msra.mxu1 %v1463_v51 }
 0x2d8   :  { %1465 = vmatprep.subr.bf16.mxu1 %v1488_v34 }
 0x2db   :  { %1467 = vmatpush3.bf16.msra.mxu1 %v1466_v54 }
 0x2dc   :  { %1468 = vmatprep.subr.bf16.mxu1 %v1488_v34 }
 0x2df   :  { %1470 = vmatpush3.bf16.msra.mxu1 %v1469_v62 }
 0x3a5   :  { %v733_v56 = vpop.f32.mrb[4].mxu1 }
 0x3a6   :  { %v734_v57 = vadd.f32 %v1013_v55, %v733_v56  ;;  %v1173_v58 = vpop.f32.mrb[5].mxu1 }
 0x3a8   :  { %v737_v59 = vmax.f32 %v734_v57, 0.0 }
 0x3aa   :  { %1191 = vmatmul.mubr.msk.f32.vlgmr.msra.gmra.mrb[6].mxu0 %vm574_vm1, %v737_v59 }
 0x3ab   :  { %1228 = vmatprep.mubr.msk.f32.mxu0 %vm1489_vm0, %v1490_v6  ;;  %1473 = vmatpush3.bf16.msra.mxu0 %v1472_v2  ;;  %v921_v6 = vld [vmem:[%s2343_s13 + $0x28] sm:$0xff] }
 0x3ac   :  { %1474 = vmatprep.subr.bf16.mxu0 %v1488_v34  ;;  %v1478_v7 = vpack.c.bf16 %v921_v6, %v920_v5 }
 0x3af   :  { %1476 = vmatpush3.bf16.msra.mxu0 %v1475_v4 }
 0x3b0   :  { %1477 = vmatprep.subr.bf16.mxu0 %v1488_v34 }
 0x3b3   :  { %1479 = vmatpush3.bf16.msra.mxu0 %v1478_v7 }
 0x3b4   :  { %1480 = vmatprep.subr.bf16.mxu0 %v1488_v34  ;;  %v1017_v34 = vld [vmem:[%s2345_s12] ss:$0 sm:$0xff] }
 0x3b7   :  { %1482 = vmatpush3.bf16.msra.mxu0 %v1481_v15 }
 0x47d   :  { %v822_v9 = vpop.f32.mrb[6].mxu0 }
 0x47e   :  { %v823_v10 = vadd.f32 %v1015_v8, %v822_v9  ;;  %v1192_v11 = vpop.f32.mrb[7].mxu0 }
 0x480   :  { %v826_v12 = vmax.f32 %v823_v10, 0.0 }
 0x482   :  { %1210 = vmatmul.mubr.msk.f32.vlgmr.msra.gmra.mrb[6].mxu1 %vm574_vm1, %v826_v12 }
 0x555   :  { %v911_v16 = vpop.f32.mrb[6].mxu1 }
 0x556   :  { %v912_v17 = vadd.f32 %v1017_v34, %v911_v16  ;;  %v1211_v18 = vpop.f32.mrb[7].mxu1 }
 0x558   :  { %v915_v19 = vmax.f32 %v912_v17, 0.0 }
 0x55a   :  { %1229 = vmatmul.mubr.msk.f32.vlgmr.msra.gmra.mrb[8].mxu0 %vm574_vm1, %v915_v19 }
 0x62d   :  { %v1000_v21 = vpop.f32.mrb[8].mxu0 }
 0x62e   :  { %v1001_v22 = vadd.f32 %v1019_v20, %v1000_v21  ;;  %v1230_v23 = vpop.f32.mrb[9].mxu0 }
 0x630   :  { %1486 = vtanh.f32 %v1001_v22 }
 0x63a   :  { %v1487_v24 = vpop.eup %1486 }
 0x63b   :  { %1005 = vst [vmem:[%s2347_s15] sm:$0xff] %v1487_v24 }

</bundles_post_ra>
